<compile_context>
chip_gen: v7x
topology: tpu7x:2x2x1
jax: 0.10.0
libtpu: 0.0.40
codegen_flags: <defaults>
</compile_context>

<pallas_src>
import jax
import jax.numpy as jnp
from jax.experimental import pallas as pl
from jax.experimental.pallas import tpu as pltpu


def _fusion_kernel(b_ref, w_ref, x1_ref, x2_ref, x3_ref, x4_ref, o_ref):
    """b_ref: SMEM (4,) f32 bias (scalar-prefetched).
    w_ref:  VMEM (C, 16) f32, with w_ref[c, 4*o + i] = W[o, i*C + c].
    x*_ref / o_ref: VMEM (C, TILE_P) blocks (pixels lane-dense), native dtype."""
    C, TP = x1_ref.shape
    x_refs = (x1_ref, x2_ref, x3_ref, x4_ref)

    # Inner lane-chunk size: bounds vreg live ranges so per-chunk values stay in
    # registers (no VMEM spill traffic through the vst slot).
    if TP % 512 == 0 and C <= 8:
        tpc = 512
    elif TP % 256 == 0 and C <= 16:
        tpc = 256
    elif TP % 128 == 0:
        tpc = 128
    else:
        tpc = TP
    n_chunks = TP // tpc

    # Tiny lane-broadcast weight columns + bias scalars, hoisted out of the loop.
    w_cols = [[w_ref[:, 4 * o + i:4 * o + i + 1] for i in range(4)]
              for o in range(4)]
    bias = [b_ref[o] for o in range(4)]

    def process(p0):
        # Load each input chunk once; reuse for all four logits and the output.
        xs = [r[:, pl.ds(p0, tpc)].astype(jnp.float32) for r in x_refs]  # 4 x (C, tpc)

        # All four attention logits: full-tile multiplies (VPU) + cross-sublane
        # reduce (XLU); pack rows so the sigmoid runs on packed vregs.
        rows = []
        for o in range(4):
            t = w_cols[o][0] * xs[0]
            for i in range(1, 4):
                t = t + w_cols[o][i] * xs[i]
            rows.append(jnp.sum(t, axis=0, keepdims=True) + bias[o])     # (1, tpc)
        logits = jnp.concatenate(rows, axis=0)                           # (4, tpc)
        # Exact sigmoid (pl.reciprocal(approx=True) would shave the divide but
        # costs ~1e-4 relative error; keep exact for tight tolerances).
        attn = jax.nn.sigmoid(logits)

        out = attn[0:1, :] * xs[0]
        for o in range(1, 4):
            out = out + attn[o:o + 1, :] * xs[o]                         # (C, tpc)
        o_ref[:, pl.ds(p0, tpc)] = out.astype(o_ref.dtype)

    if n_chunks == 1:
        process(0)
    else:
        def body(j, carry):
            process(pl.multiple_of(j * tpc, tpc))
            return carry
        jax.lax.fori_loop(0, n_chunks, body, 0)


def _pick_tile_p(P, C, itemsize, block_bytes, N):
    """Lane tile: ~block_bytes of input per block, 128/512-multiple, capped so
    the grid keeps >= 4 steps when possible (v7x megacore + pipelining)."""
    lanes = max(1, block_bytes // max(1, C * itemsize))
    if lanes >= 512:
        t = (lanes // 512) * 512
    else:
        t = max(128, (lanes // 128) * 128)
    while t > 128 and N * pl.cdiv(P, t) < 4:
        t = max(128, ((t // 2) // 128) * 128)
    if t >= P:
        return P          # single pixel tile == full extent (always a legal block)
    return t


def concat_attention_fusion(x1, x2, x3, x4, weight, bias, *,
                            block_bytes=2 << 20,
                            vmem_limit_bytes=32 * 1024 * 1024):
    """x*: (N, C, H, W); weight: (4, 4*C, 1, 1); bias: (4,)."""
    N, C, H, W = x1.shape
    P = H * W
    itemsize = jnp.dtype(x1.dtype).itemsize

    # Pixels onto lanes: NCHW already has H*W contiguous last -> free reshape.
    # Native dtype is kept; the kernel upcasts per chunk.
    xs = [x.reshape(N, C, P) for x in (x1, x2, x3, x4)]

    # Weight columns as a tiny VMEM tile: w_cols[c, 4*o + i] = W[o, i*C + c].
    Wm = weight.reshape(4, 4, C).astype(jnp.float32)            # [o, i, c]
    w_cols = jnp.transpose(Wm, (2, 0, 1)).reshape(C, 16)        # [c, 4*o + i]
    b_vec = bias.reshape(4).astype(jnp.float32)

    tile_p = _pick_tile_p(P, C, itemsize, block_bytes, N)
    num_ptiles = pl.cdiv(P, tile_p)   # partial last block is clamped by Pallas

    x_spec = pl.BlockSpec((None, C, tile_p), lambda n, j, b: (n, 0, j))
    w_spec = pl.BlockSpec((C, 16), lambda n, j, b: (0, 0))

    out = pl.pallas_call(
        _fusion_kernel,
        out_shape=jax.ShapeDtypeStruct((N, C, P), x1.dtype),
        grid_spec=pltpu.PrefetchScalarGridSpec(
            num_scalar_prefetch=1,
            grid=(N, num_ptiles),
            in_specs=[w_spec, x_spec, x_spec, x_spec, x_spec],
            out_specs=pl.BlockSpec((None, C, tile_p), lambda n, j, b: (n, 0, j)),
        ),
        compiler_params=pltpu.CompilerParams(
            dimension_semantics=("parallel", "parallel"),
            vmem_limit_bytes=vmem_limit_bytes),
    )(b_vec, w_cols, *xs)

    return out.reshape(N, C, H, W)


def _reference(x1, x2, x3, x4, weight, bias):
    """Pure-JAX reference matching the PyTorch forward."""
    concat = jnp.concatenate([x1, x2, x3, x4], axis=1)           # (N, 4C, H, W)
    w = weight.reshape(4, -1)                                     # (4, 4C)
    logits = jnp.einsum('nchw,oc->nohw', concat, w) + bias[None, :, None, None]
    attn = jax.nn.sigmoid(logits)
    return (attn[:, 0:1] * x1 + attn[:, 1:2] * x2
            + attn[:, 2:3] * x3 + attn[:, 3:4] * x4)


if __name__ == "__main__":
    num_features = 4
    N, H, W = 2, 16, 16

    key = jax.random.PRNGKey(0)
    k1, k2, k3, k4, kw, kb = jax.random.split(key, 6)
    x1 = jax.random.normal(k1, (N, num_features, H, W), dtype=jnp.float32)
    x2 = jax.random.normal(k2, (N, num_features, H, W), dtype=jnp.float32)
    x3 = jax.random.normal(k3, (N, num_features, H, W), dtype=jnp.float32)
    x4 = jax.random.normal(k4, (N, num_features, H, W), dtype=jnp.float32)

    # Deterministic Conv2d(num_features*4, 4, 1) params (uniform fan-in init).
    fan_in = num_features * 4
    bound = 1.0 / (fan_in ** 0.5)
    weight = jax.random.uniform(kw, (4, fan_in, 1, 1), jnp.float32, -bound, bound)
    bias = jax.random.uniform(kb, (4,), jnp.float32, -bound, bound)

    out = concat_attention_fusion(x1, x2, x3, x4, weight, bias)
    out = jax.block_until_ready(out)

    ref = _reference(x1, x2, x3, x4, weight, bias)
    assert out.shape == (N, num_features, H, W)
    assert jnp.allclose(out, ref, atol=1e-5, rtol=1e-5)

    print("KERNEL_OK")
</pallas_src>

<mosaic_0001>
module attributes {stable_mosaic.version = 11 : i64} {
  func.func @_fusion_kernel(%arg0: i32, %arg1: i32, %arg2: memref<4xf32, #tpu.memory_space<smem>>, %arg3: memref<4x16xf32, #tpu.memory_space<vmem>>, %arg4: memref<1x4x128xf32, #tpu.memory_space<vmem>>, %arg5: memref<1x4x128xf32, #tpu.memory_space<vmem>>, %arg6: memref<1x4x128xf32, #tpu.memory_space<vmem>>, %arg7: memref<1x4x128xf32, #tpu.memory_space<vmem>>, %arg8: memref<1x4x128xf32, #tpu.memory_space<vmem>>) attributes {dimension_semantics = [#tpu.dimension_semantics<parallel>, #tpu.dimension_semantics<parallel>], iteration_bounds = array<i64: 2, 2>, scalar_prefetch = 1 : i64, scratch_operands = 0 : i64, tpu.core_type = #tpu.core_type<tc>, window_params = [{pipeline_mode = #tpu.pipeline_mode<synchronous>, transform_indices = @transform_0, window_bounds = array<i64: 4, 16>}, {transform_indices = @transform_1, window_bounds = array<i64: 1, 4, 128>}, {transform_indices = @transform_2, window_bounds = array<i64: 1, 4, 128>}, {transform_indices = @transform_3, window_bounds = array<i64: 1, 4, 128>}, {transform_indices = @transform_4, window_bounds = array<i64: 1, 4, 128>}, {transform_indices = @transform_5, window_bounds = array<i64: 1, 4, 128>}]} {
    %c0 = arith.constant 0 : index
    %c0_0 = arith.constant 0 : index
    %0 = vector.load %arg3[%c0, %c0_0] : memref<4x16xf32, #tpu.memory_space<vmem>>, vector<4x1xf32>
    %c0_1 = arith.constant 0 : index
    %c1 = arith.constant 1 : index
    %1 = vector.load %arg3[%c0_1, %c1] : memref<4x16xf32, #tpu.memory_space<vmem>>, vector<4x1xf32>
    %c0_2 = arith.constant 0 : index
    %c2 = arith.constant 2 : index
    %2 = vector.load %arg3[%c0_2, %c2] : memref<4x16xf32, #tpu.memory_space<vmem>>, vector<4x1xf32>
    %c0_3 = arith.constant 0 : index
    %c3 = arith.constant 3 : index
    %3 = vector.load %arg3[%c0_3, %c3] : memref<4x16xf32, #tpu.memory_space<vmem>>, vector<4x1xf32>
    %c0_4 = arith.constant 0 : index
    %c4 = arith.constant 4 : index
    %4 = vector.load %arg3[%c0_4, %c4] : memref<4x16xf32, #tpu.memory_space<vmem>>, vector<4x1xf32>
    %c0_5 = arith.constant 0 : index
    %c5 = arith.constant 5 : index
    %5 = vector.load %arg3[%c0_5, %c5] : memref<4x16xf32, #tpu.memory_space<vmem>>, vector<4x1xf32>
    %c0_6 = arith.constant 0 : index
    %c6 = arith.constant 6 : index
    %6 = vector.load %arg3[%c0_6, %c6] : memref<4x16xf32, #tpu.memory_space<vmem>>, vector<4x1xf32>
    %c0_7 = arith.constant 0 : index
    %c7 = arith.constant 7 : index
    %7 = vector.load %arg3[%c0_7, %c7] : memref<4x16xf32, #tpu.memory_space<vmem>>, vector<4x1xf32>
    %c0_8 = arith.constant 0 : index
    %c8 = arith.constant 8 : index
    %8 = vector.load %arg3[%c0_8, %c8] : memref<4x16xf32, #tpu.memory_space<vmem>>, vector<4x1xf32>
    %c0_9 = arith.constant 0 : index
    %c9 = arith.constant 9 : index
    %9 = vector.load %arg3[%c0_9, %c9] : memref<4x16xf32, #tpu.memory_space<vmem>>, vector<4x1xf32>
    %c0_10 = arith.constant 0 : index
    %c10 = arith.constant 10 : index
    %10 = vector.load %arg3[%c0_10, %c10] : memref<4x16xf32, #tpu.memory_space<vmem>>, vector<4x1xf32>
    %c0_11 = arith.constant 0 : index
    %c11 = arith.constant 11 : index
    %11 = vector.load %arg3[%c0_11, %c11] : memref<4x16xf32, #tpu.memory_space<vmem>>, vector<4x1xf32>
    %c0_12 = arith.constant 0 : index
    %c12 = arith.constant 12 : index
    %12 = vector.load %arg3[%c0_12, %c12] : memref<4x16xf32, #tpu.memory_space<vmem>>, vector<4x1xf32>
    %c0_13 = arith.constant 0 : index
    %c13 = arith.constant 13 : index
    %13 = vector.load %arg3[%c0_13, %c13] : memref<4x16xf32, #tpu.memory_space<vmem>>, vector<4x1xf32>
    %c0_14 = arith.constant 0 : index
    %c14 = arith.constant 14 : index
    %14 = vector.load %arg3[%c0_14, %c14] : memref<4x16xf32, #tpu.memory_space<vmem>>, vector<4x1xf32>
    %c0_15 = arith.constant 0 : index
    %c15 = arith.constant 15 : index
    %15 = vector.load %arg3[%c0_15, %c15] : memref<4x16xf32, #tpu.memory_space<vmem>>, vector<4x1xf32>
    %c0_16 = arith.constant 0 : index
    %16 = memref.load %arg2[%c0_16] : memref<4xf32, #tpu.memory_space<smem>>
    %c1_17 = arith.constant 1 : index
    %17 = memref.load %arg2[%c1_17] : memref<4xf32, #tpu.memory_space<smem>>
    %c2_18 = arith.constant 2 : index
    %18 = memref.load %arg2[%c2_18] : memref<4xf32, #tpu.memory_space<smem>>
    %c3_19 = arith.constant 3 : index
    %19 = memref.load %arg2[%c3_19] : memref<4xf32, #tpu.memory_space<smem>>
    %c0_20 = arith.constant 0 : index
    %c0_21 = arith.constant 0 : index
    %c0_22 = arith.constant 0 : index
    %20 = vector.load %arg4[%c0_20, %c0_21, %c0_22] : memref<1x4x128xf32, #tpu.memory_space<vmem>>, vector<1x4x128xf32>
    %21 = vector.shape_cast %20 : vector<1x4x128xf32> to vector<4x128xf32>
    %c0_23 = arith.constant 0 : index
    %c0_24 = arith.constant 0 : index
    %c0_25 = arith.constant 0 : index
    %22 = vector.load %arg5[%c0_23, %c0_24, %c0_25] : memref<1x4x128xf32, #tpu.memory_space<vmem>>, vector<1x4x128xf32>
    %23 = vector.shape_cast %22 : vector<1x4x128xf32> to vector<4x128xf32>
    %c0_26 = arith.constant 0 : index
    %c0_27 = arith.constant 0 : index
    %c0_28 = arith.constant 0 : index
    %24 = vector.load %arg6[%c0_26, %c0_27, %c0_28] : memref<1x4x128xf32, #tpu.memory_space<vmem>>, vector<1x4x128xf32>
    %25 = vector.shape_cast %24 : vector<1x4x128xf32> to vector<4x128xf32>
    %c0_29 = arith.constant 0 : index
    %c0_30 = arith.constant 0 : index
    %c0_31 = arith.constant 0 : index
    %26 = vector.load %arg7[%c0_29, %c0_30, %c0_31] : memref<1x4x128xf32, #tpu.memory_space<vmem>>, vector<1x4x128xf32>
    %27 = vector.shape_cast %26 : vector<1x4x128xf32> to vector<4x128xf32>
    %28 = vector.broadcast %0 : vector<4x1xf32> to vector<4x128xf32>
    %29 = arith.mulf %28, %21 : vector<4x128xf32>
    %30 = vector.broadcast %1 : vector<4x1xf32> to vector<4x128xf32>
    %31 = arith.mulf %30, %23 : vector<4x128xf32>
    %32 = arith.addf %29, %31 : vector<4x128xf32>
    %33 = vector.broadcast %2 : vector<4x1xf32> to vector<4x128xf32>
    %34 = arith.mulf %33, %25 : vector<4x128xf32>
    %35 = arith.addf %32, %34 : vector<4x128xf32>
    %36 = vector.broadcast %3 : vector<4x1xf32> to vector<4x128xf32>
    %37 = arith.mulf %36, %27 : vector<4x128xf32>
    %38 = arith.addf %35, %37 : vector<4x128xf32>
    %cst = arith.constant dense<0.000000e+00> : vector<128xf32>
    %39 = vector.multi_reduction <add>, %38, %cst [0] : vector<4x128xf32> to vector<128xf32>
    %40 = vector.shape_cast %39 : vector<128xf32> to vector<1x128xf32>
    %41 = vector.broadcast %16 : f32 to vector<1x128xf32>
    %42 = arith.addf %40, %41 : vector<1x128xf32>
    %43 = vector.broadcast %4 : vector<4x1xf32> to vector<4x128xf32>
    %44 = arith.mulf %43, %21 : vector<4x128xf32>
    %45 = vector.broadcast %5 : vector<4x1xf32> to vector<4x128xf32>
    %46 = arith.mulf %45, %23 : vector<4x128xf32>
    %47 = arith.addf %44, %46 : vector<4x128xf32>
    %48 = vector.broadcast %6 : vector<4x1xf32> to vector<4x128xf32>
    %49 = arith.mulf %48, %25 : vector<4x128xf32>
    %50 = arith.addf %47, %49 : vector<4x128xf32>
    %51 = vector.broadcast %7 : vector<4x1xf32> to vector<4x128xf32>
    %52 = arith.mulf %51, %27 : vector<4x128xf32>
    %53 = arith.addf %50, %52 : vector<4x128xf32>
    %cst_32 = arith.constant dense<0.000000e+00> : vector<128xf32>
    %54 = vector.multi_reduction <add>, %53, %cst_32 [0] : vector<4x128xf32> to vector<128xf32>
    %55 = vector.shape_cast %54 : vector<128xf32> to vector<1x128xf32>
    %56 = vector.broadcast %17 : f32 to vector<1x128xf32>
    %57 = arith.addf %55, %56 : vector<1x128xf32>
    %58 = vector.broadcast %8 : vector<4x1xf32> to vector<4x128xf32>
    %59 = arith.mulf %58, %21 : vector<4x128xf32>
    %60 = vector.broadcast %9 : vector<4x1xf32> to vector<4x128xf32>
    %61 = arith.mulf %60, %23 : vector<4x128xf32>
    %62 = arith.addf %59, %61 : vector<4x128xf32>
    %63 = vector.broadcast %10 : vector<4x1xf32> to vector<4x128xf32>
    %64 = arith.mulf %63, %25 : vector<4x128xf32>
    %65 = arith.addf %62, %64 : vector<4x128xf32>
    %66 = vector.broadcast %11 : vector<4x1xf32> to vector<4x128xf32>
    %67 = arith.mulf %66, %27 : vector<4x128xf32>
    %68 = arith.addf %65, %67 : vector<4x128xf32>
    %cst_33 = arith.constant dense<0.000000e+00> : vector<128xf32>
    %69 = vector.multi_reduction <add>, %68, %cst_33 [0] : vector<4x128xf32> to vector<128xf32>
    %70 = vector.shape_cast %69 : vector<128xf32> to vector<1x128xf32>
    %71 = vector.broadcast %18 : f32 to vector<1x128xf32>
    %72 = arith.addf %70, %71 : vector<1x128xf32>
    %73 = vector.broadcast %12 : vector<4x1xf32> to vector<4x128xf32>
    %74 = arith.mulf %73, %21 : vector<4x128xf32>
    %75 = vector.broadcast %13 : vector<4x1xf32> to vector<4x128xf32>
    %76 = arith.mulf %75, %23 : vector<4x128xf32>
    %77 = arith.addf %74, %76 : vector<4x128xf32>
    %78 = vector.broadcast %14 : vector<4x1xf32> to vector<4x128xf32>
    %79 = arith.mulf %78, %25 : vector<4x128xf32>
    %80 = arith.addf %77, %79 : vector<4x128xf32>
    %81 = vector.broadcast %15 : vector<4x1xf32> to vector<4x128xf32>
    %82 = arith.mulf %81, %27 : vector<4x128xf32>
    %83 = arith.addf %80, %82 : vector<4x128xf32>
    %cst_34 = arith.constant dense<0.000000e+00> : vector<128xf32>
    %84 = vector.multi_reduction <add>, %83, %cst_34 [0] : vector<4x128xf32> to vector<128xf32>
    %85 = vector.shape_cast %84 : vector<128xf32> to vector<1x128xf32>
    %86 = vector.broadcast %19 : f32 to vector<1x128xf32>
    %87 = arith.addf %85, %86 : vector<1x128xf32>
    %88 = tpu.concatenate %42, %57, %72, %87 in 0 : vector<1x128xf32>, vector<1x128xf32>, vector<1x128xf32>, vector<1x128xf32> -> vector<4x128xf32>
    %89 = arith.negf %88 : vector<4x128xf32>
    %90 = math.exp %89 : vector<4x128xf32>
    %cst_35 = arith.constant 1.000000e+00 : f32
    %91 = vector.broadcast %cst_35 : f32 to vector<4x128xf32>
    %92 = arith.addf %91, %90 : vector<4x128xf32>
    %93 = arith.divf %91, %92 : vector<4x128xf32>
    %94 = vector.extract_strided_slice %93 {offsets = [0, 0], sizes = [1, 128], strides = [1, 1]} : vector<4x128xf32> to vector<1x128xf32>
    %95 = vector.broadcast %94 : vector<1x128xf32> to vector<4x128xf32>
    %96 = arith.mulf %95, %21 : vector<4x128xf32>
    %97 = vector.extract_strided_slice %93 {offsets = [1, 0], sizes = [1, 128], strides = [1, 1]} : vector<4x128xf32> to vector<1x128xf32>
    %98 = vector.broadcast %97 : vector<1x128xf32> to vector<4x128xf32>
    %99 = arith.mulf %98, %23 : vector<4x128xf32>
    %100 = arith.addf %96, %99 : vector<4x128xf32>
    %101 = vector.extract_strided_slice %93 {offsets = [2, 0], sizes = [1, 128], strides = [1, 1]} : vector<4x128xf32> to vector<1x128xf32>
    %102 = vector.broadcast %101 : vector<1x128xf32> to vector<4x128xf32>
    %103 = arith.mulf %102, %25 : vector<4x128xf32>
    %104 = arith.addf %100, %103 : vector<4x128xf32>
    %105 = vector.extract_strided_slice %93 {offsets = [3, 0], sizes = [1, 128], strides = [1, 1]} : vector<4x128xf32> to vector<1x128xf32>
    %106 = vector.broadcast %105 : vector<1x128xf32> to vector<4x128xf32>
    %107 = arith.mulf %106, %27 : vector<4x128xf32>
    %108 = arith.addf %104, %107 : vector<4x128xf32>
    %c0_36 = arith.constant 0 : index
    %c0_37 = arith.constant 0 : index
    %c0_38 = arith.constant 0 : index
    %109 = vector.load %arg8[%c0_36, %c0_37, %c0_38] : memref<1x4x128xf32, #tpu.memory_space<vmem>>, vector<1x4x128xf32>
    %110 = vector.shape_cast %109 : vector<1x4x128xf32> to vector<4x128xf32>
    %111 = vector.shape_cast %108 : vector<4x128xf32> to vector<1x4x128xf32>
    tpu.vector_store %arg8[%c0_36, %c0_37, %c0_38], %111 {strides = array<i32>} : memref<1x4x128xf32, #tpu.memory_space<vmem>>, vector<1x4x128xf32>,
    return
  }
  func.func @transform_0(%arg0: i32, %arg1: i32, %arg2: memref<4xf32, #tpu.memory_space<smem>>) -> (i32, i32) {
    %c0_i32 = arith.constant 0 : i32
    %c0_i32_0 = arith.constant 0 : i32
    %c0_i32_1 = arith.constant 0 : i32
    return %c0_i32, %c0_i32_0 : i32, i32
  }
  func.func @transform_1(%arg0: i32, %arg1: i32, %arg2: memref<4xf32, #tpu.memory_space<smem>>) -> (i32, i32, i32) {
    %c0_i32 = arith.constant 0 : i32
    %c0_i32_0 = arith.constant 0 : i32
    return %arg0, %c0_i32, %arg1 : i32, i32, i32
  }
  func.func @transform_2(%arg0: i32, %arg1: i32, %arg2: memref<4xf32, #tpu.memory_space<smem>>) -> (i32, i32, i32) {
    %c0_i32 = arith.constant 0 : i32
    %c0_i32_0 = arith.constant 0 : i32
    return %arg0, %c0_i32, %arg1 : i32, i32, i32
  }
  func.func @transform_3(%arg0: i32, %arg1: i32, %arg2: memref<4xf32, #tpu.memory_space<smem>>) -> (i32, i32, i32) {
    %c0_i32 = arith.constant 0 : i32
    %c0_i32_0 = arith.constant 0 : i32
    return %arg0, %c0_i32, %arg1 : i32, i32, i32
  }
  func.func @transform_4(%arg0: i32, %arg1: i32, %arg2: memref<4xf32, #tpu.memory_space<smem>>) -> (i32, i32, i32) {
    %c0_i32 = arith.constant 0 : i32
    %c0_i32_0 = arith.constant 0 : i32
    return %arg0, %c0_i32, %arg1 : i32, i32, i32
  }
  func.func @transform_5(%arg0: i32, %arg1: i32, %arg2: memref<4xf32, #tpu.memory_space<smem>>) -> (i32, i32, i32) {
    %c0_i32 = arith.constant 0 : i32
    %c0_i32_0 = arith.constant 0 : i32
    return %arg0, %c0_i32, %arg1 : i32, i32, i32
  }
}

</mosaic_0001>

<bundles_post_ra>
// kernel: tpu_custom_call.1
= control target key start
LH: loop header
LB: loop body
LE: loop exit
PB: predicated region body
PF: predicated region fallthrough
CT: control target
= control target key end

     0   :  { %s1580_s0 = inlined_call_operand.hbm [shape: f32[4], index: 0, kind: input, shape index: {}]   ;;  %s1581_s1 = inlined_call_operand.hbm [shape: f32[4,16], index: 1, kind: input, shape index: {}]   ;;  %s1582_s2 = inlined_call_operand.hbm [shape: f32[2,4,256], index: 2, kind: input, shape index: {}]   ;;  %s1583_s3 = inlined_call_operand.hbm [shape: f32[2,4,256], index: 3, kind: input, shape index: {}]   ;;  %s1584_s4 = inlined_call_operand.hbm [shape: f32[2,4,256], index: 4, kind: input, shape index: {}]   ;;  %s1585_s5 = inlined_call_operand.vmem [shape: f32[2,4,256], index: 5, kind: input, shape index: {}]   ;;  %s1586_s6 = inlined_call_operand.hbm [shape: f32[2,4,256], index: 6, kind: output, shape index: {}]  }
   0x1   :  { %1606 = sst [smem:[#allocation26_spill]] %s1582_s2  ;;  %s907_s23 = scalar_lea.hbm %s1580_s0, 16 }
   0x2   :  { %p908_p0 = scmp.ne.s32.totalorder %s1580_s0, %s907_s23  ;;  %p911_p1 = scmp.lt.u32.totalorder %s907_s23, %s1580_s0 }
   0x4   :  { %p913_p2 = pnand %p911_p1, %p908_p0 }
   0x6   :  { %916 = shalt.err (!%p913_p2)  }
   0x7   :  { %s1145_s28 = smov [#allocation3]  }
   0x8   :  { %12 = dma.hbm_to_smem %s1580_s0, 16, %s1145_s28, [#allocation2] }
   0x9   :  { %1095 = dma.done.wait [#allocation2], 16 }
   0xa   :  { %1096 = vsyncadd [#allocation2], 4294967280 }
   0xb   :  { %14 = sfence }
   0xc   :  { %15 = vsyncpa [#allocation5], 0 }
   0xd   :  { %16 = vsyncpa [#allocation8], 0 }
   0xe   :  { %18 = vsyncpa [#allocation8 + $0x1], 0 }
   0xf   :  { %19 = vsyncpa [#allocation11], 0 }
  0x10   :  { %21 = vsyncpa [#allocation11 + $0x1], 0 }
  0x11   :  { %22 = vsyncpa [#allocation6], 0 }
  0x12   :  { %24 = vsyncpa [#allocation6 + $0x1], 0  ;;  %s1214_s7 = smov 0   ;;  %s1216_s8 = smov 0  }
  0x13   :  { %s1218_s9 = smov 0   ;;  %s1220_s10 = smov 0  }
  0x14   :  { %s1222_s11 = smov 0   ;;  %s1224_s0 = smov 0  }
  0x15   :  { %s1226_s12 = smov 0   ;;  %s1228_s13 = smov 0  }
  0x16 LB: > { %1607 = sst [smem:[#allocation18_spill]] %s1115_s7  ;;  %s39_s14 = sadd.s32 1, %s1135_s0  ;;  %s1143_s13 = sphi %s1228_s13, %s30_s13   ;;  %s1139_s12 = sphi %s1226_s12, %s1643_s12   ;;  %s1135_s0 = sphi %s1224_s0, %s1642_s0   ;;  %s1131_s11 = sphi %s1222_s11, %s1641_s11   ;;  %s1127_s10 = sphi %s1220_s10, %s1640_s10   ;;  %s1123_s9 = sphi %s1218_s9, %s1646_s9   ;;  %s1119_s8 = sphi %s1216_s8, %s1645_s8   ;;  %s1115_s7 = sphi %s1214_s7, %s1644_s7  }
  0x17   : > { %1608 = sst [smem:[#allocation19_spill]] %s1135_s0  ;;  %s42_s15 = sadd.s32 1, %s1139_s12 }
  0x18   : > { %1609 = sst [smem:[#allocation20_spill]] %s1139_s12  ;;  %p40_p3 = scmp.ge.s32.totalorder %s39_s14, 2 }
  0x19   : > { %1610 = sst [smem:[#allocation21_spill]] %s1143_s13  ;;  %s72_s16 = sadd.s32 1, %s1123_s9 }
  0x1a   : > { %p1589_p4 = scmp.ne.s32.totalorder %s1123_s9, %s1119_s8  ;;  %p80_p5 = scmp.eq.s32.totalorder %s1143_s13, 0 }
  0x1b   : > { %s1648_s14 = smov (%p40_p3, %s39_s14), 0  ;;  %s1650_s15 = smov (!%p40_p3, %s42_s15), %s1139_s12 }
  0x1c   : > { %1611 = sst [smem:[#allocation22_spill]] %s1648_s14  ;;  %s68_s17 = ssub.s32 %s1135_s0, %s1648_s14 }
  0x1d   : > { %p1268_p6 = por %p80_p5, %p1589_p4  ;;  %p44_p7 = scmp.ge.s32.totalorder %s1650_s15, 2 }
  0x1e   : > { %p801_p8 = scmp.lt.s32.totalorder %s1143_s13, 4  ;;  %s232_s19 = sand.u32 1, %s1143_s13  }
  0x1f   : > { %s1652_s15 = smov (%p44_p7, %s1650_s15), 0  ;;  %s1590_s20 = sand.u32 1, %s1123_s9  }
  0x20   : > { %1613 = sst [smem:[#allocation23_spill]] %s1652_s15  ;;  %s67_s21 = ssub.s32 %s1139_s12, %s1652_s15 }
  0x21   : > { %s1281_s22 = sshll.u32 %s1590_s20, 2  ;;  %s69_s23 = sor.u32 %s68_s17, %s67_s21 }
  0x22   : > { %p70_p9 = scmp.eq.s32.totalorder %s69_s23, 0  ;;  %s745_s24 = sshll.u32 %s1139_s12, 1 }
  0x23   : > { %s241_s25 = sadd.s32 %s1135_s0, %s745_s24  ;;  %s236_s26 = scalar_lea.vmem [#allocation7], %s1281_s22 }
  0x24   : > { %s245_s27 = sshll.u32 %s236_s26, 4  ;;  %s1289_s29 = sshll.u32 %s241_s25, 6  ;;  %s1291_s27 = int_to_ptr.vmem [resolvable:$true] %s245_s27 }
  0x25   : > { %s1287_s28 = scalar_select %p70_p9, %s1123_s9, %s72_s16  }
  0x26   : > { %s1615_s2 = sld [smem:[#allocation26_spill]]  ;;  %p1303_p10 = pnand %p801_p8, %p1268_p6 }
  0x27   : > { %1614 = sst [smem:[#allocation24_spill]] %s1287_s28  ;;  %s1307_s16 = scalar_lea.sflag [#allocation8], %s232_s19 }
  0x28   : > { %s1616_s17 = scalar_select %p1303_p10, 1, 0 }
  0x29   : > { %p1313_p12 = pneg %p1303_p10 }
  0x2b   : > { %s1617_s14 = scalar_select %p1313_p12, 1, 0 }
  0x2c   : > { %s1297_s15 = scalar_lea.hbm %s1615_s2, %s1289_s29  ;;  %s922_s24 = scalar_lea.hbm %s1615_s2, 256 }
  0x2d   : > { %s917_s21 = scalar_lea.hbm %s1297_s15, 64  ;;  %p923_p1 = scmp.lt.u32.totalorder %s1297_s15, %s1615_s2 }
  0x2e   : > { %p918_p11 = scmp.ne.s32.totalorder %s1297_s15, %s917_s21  ;;  %p924_p2 = scmp.lt.u32.totalorder %s922_s24, %s917_s21 }
  0x2f   : > { %p926_p5 = scmp.lt.u32.totalorder %s917_s21, %s1297_s15 }
  0x30   : > { %p920_p13 = pnand %p1313_p12, %p918_p11  ;;  %p925_p3 = por %p924_p2, %p923_p1 }
  0x32   : > { %p921_p0 = pneg %p920_p13  ;;  %p927_p6 = por %p926_p5, %p925_p3 }
  0x34   : > { %p928_p7 = pnand %p927_p6, %p921_p0 }
  0x36   : > { %931 = shalt.err (!%p928_p7)
}
  0x37   : > { %s932_s19 = scalar_lea.vmem %s1291_s27, 64  ;;  %s1146_s30 = smov [#allocation7]  }
  0x38   : > { %p933_p8 = scmp.ne.s32.totalorder %s1291_s27, %s932_s19  ;;  %s937_s18 = sshll.u32 %s1146_s30, 4  ;;  %s938_s18 = int_to_ptr.vmem [resolvable:$false] %s937_s18 }
  0x39   : > { %s939_s23 = scalar_lea.vmem %s938_s18, 128  ;;  %p940_p13 = scmp.lt.s32.totalorder %s1291_s27, %s938_s18 }
  0x3a   : > { %p935_p9 = pnand %p933_p8, %p1313_p12  ;;  %p941_p4 = scmp.lt.s32.totalorder %s939_s23, %s932_s19 }
  0x3c   : > { %p936_p11 = pneg %p935_p9  ;;  %p942_p1 = por %p941_p4, %p940_p13 }
  0x3e   : > { %p943_p2 = pnand %p942_p1, %p936_p11 }
  0x40   : > { %946 = shalt.err (!%p943_p2)
}
  0x41   : > { %789 = dma.hbm_to_vmem [thread:$0]  (!%p1303_p10), %s1297_s15, 64, %s1291_s27, %s1307_s16  }
  0x42   : > { %s1338_s21 = sadd.s32 4294967295, %s1143_s13   ;;  %s740_s24 = sadd.s32 4294967294, %s1143_s13  }
  0x43   : > { %p85_p4 = scmp.ne.s32.totalorder %s1119_s8, %s1115_s7  ;;  %p1594_p0 = scmp.eq.s32.totalorder %s1338_s21, 0 }
  0x44   : > { %p195_p3 = scmp.eq.s32.totalorder %s1338_s21, 3  ;;  %p201_p5 = scmp.eq.s32.totalorder %s740_s24, 3 }
  0x45   : > { %p741_p6 = scmp.ge.s32.totalorder %s1143_s13, 1  ;;  %p1348_p7 = por %p1594_p0, %p85_p4 }
  0x46   : > { %p1619_p8 = scmp.ne.s32.totalorder %s1123_s9, %s1119_s8  ;;  %p1359_p11 = por %p201_p5, %p85_p4 }
  0x47   : > { %s1618_s25 = scalar_select %p1348_p7, 1, 0 }
  0x48   : > { %p1355_p9 = por %p195_p3, %p1619_p8  ;;  %p208_p13 = scmp.lt.s32.totalorder %s1143_s13, 5 }
  0x49   : > { %s1621_s27 = scalar_select %p1359_p11, 1, 0 }
  0x4a   : > { %s1620_s15 = scalar_select %p1355_p9, 1, 0 }
  0x4b   : > { %1622 = sst [smem:[#allocation25_spill]] %s1621_s27  ;;  %p1364_p1 = pnand %p741_p6, %p208_p13 }
  0x4c   : > { %s1147_s19 = smov [#allocation4]   ;;  %s1376_s24 = scalar_lea.hbm %s1583_s3, %s1289_s29 }
  0x4d   : > { %s1623_s26 = scalar_select %p1364_p1, 1, 0 }
  0x4e   : > { %s221_s30 = sshll.u32 %s1147_s19, 4  ;;  %p782_p2 = pneg %p1364_p1  ;;  %s1368_s30 = int_to_ptr.vmem [resolvable:$true] %s221_s30 }
  0x4f   : > { %s256_s20 = scalar_lea.vmem [#allocation9], %s1281_s22  ;;  %s947_s19 = scalar_lea.hbm %s1376_s24, 64 }
  0x50   : > { %s265_s2 = sshll.u32 %s256_s20, 4  ;;  %p1381_p4 = pnand %p782_p2, %p1594_p0  ;;  %s266_s2 = int_to_ptr.vmem [resolvable:$true] %s265_s2 }
  0x51   : > { %p948_p3 = scmp.ne.s32.totalorder %s1376_s24, %s947_s19  ;;  %s952_s0 = scalar_lea.hbm %s1583_s3, 256 }
  0x52   : > { %s1624_s12 = scalar_select %p1381_p4, 1, 0 }
  0x53   : > { %p950_p5 = pnand %p948_p3, %p1313_p12  ;;  %p953_p8 = scmp.lt.u32.totalorder %s1376_s24, %s1583_s3 }
  0x54   : > { %p954_p13 = scmp.lt.u32.totalorder %s952_s0, %s947_s19  ;;  %p956_p2 = scmp.lt.u32.totalorder %s947_s19, %s1376_s24 }
  0x55   : > { %p951_p6 = pneg %p950_p5 }
  0x56   : > { %p955_p11 = por %p954_p13, %p953_p8 }
  0x58   : > { %p957_p0 = por %p956_p2, %p955_p11 }
  0x5a   : > { %p958_p9 = pnand %p957_p0, %p951_p6 }
  0x5c   : > { %961 = shalt.err (!%p958_p9)
}
  0x5d   : > { %s962_s20 = scalar_lea.vmem %s266_s2, 64  ;;  %s1148_s7 = smov [#allocation9]  }
  0x5e   : > { %p963_p7 = scmp.ne.s32.totalorder %s266_s2, %s962_s20  ;;  %s967_s13 = sshll.u32 %s1148_s7, 4  ;;  %s968_s13 = int_to_ptr.vmem [resolvable:$false] %s967_s13 }
  0x5f   : > { %s969_s18 = scalar_lea.vmem %s968_s13, 128  ;;  %p970_p1 = scmp.lt.s32.totalorder %s266_s2, %s968_s13 }
  0x60   : > { %p965_p3 = pnand %p963_p7, %p1313_p12  ;;  %p971_p4 = scmp.lt.s32.totalorder %s969_s18, %s962_s20 }
  0x62   : > { %p966_p5 = pneg %p965_p3  ;;  %p972_p10 = por %p971_p4, %p970_p1 }
  0x64   : > { %p973_p8 = pnand %p972_p10, %p966_p5 }
  0x66   : > { %976 = shalt.err (!%p973_p8)
}
  0x67   : > { %p1625_p13 = scmp.ne.s32.totalorder %s1616_s17, 0  ;;  %s977_s27 = scalar_lea.hbm %s1581_s1, 64 }
  0x68   : > { %p978_p0 = scmp.ne.s32.totalorder %s1581_s1, %s977_s27  ;;  %p1626_p7 = scmp.ne.s32.totalorder %s1624_s12, 0 }
  0x69   : > { %792 = dma.hbm_to_vmem [thread:$0]  (!%p1625_p13), %s1376_s24, 64, %s266_s2, %s1307_s16  }
  0x6a   : > { %p979_p9 = pneg %p1626_p7  ;;  %p984_p10 = scmp.lt.u32.totalorder %s977_s27, %s1581_s1 }
  0x6c   : > { %p980_p11 = pnand %p979_p9, %p978_p0 }
  0x6e   : > { %p981_p1 = pneg %p980_p11 }
  0x70   : > { %p986_p4 = pnand %p984_p10, %p981_p1 }
  0x72   : > { %989 = shalt.err (!%p986_p4)
}
  0x73   : > { %s990_s2 = scalar_lea.vmem %s1368_s30, 64  ;;  %p998_p5 = scmp.lt.s32.totalorder %s1368_s30, %s1368_s30 }
  0x74   : > { %p991_p6 = scmp.ne.s32.totalorder %s1368_s30, %s990_s2  ;;  %p999_p8 = scmp.lt.s32.totalorder %s990_s2, %s990_s2 }
  0x76   : > { %p993_p2 = pnand %p991_p6, %p979_p9  ;;  %p1000_p13 = por %p999_p8, %p998_p5 }
  0x78   : > { %p994_p3 = pneg %p993_p2 }
  0x7a   : > { %p1001_p12 = pnand %p1000_p13, %p994_p3 }
  0x7c   : > { %1004 = shalt.err (!%p1001_p12)
}
  0x7d   : > { %785 = dma.hbm_to_vmem [thread:$0]  (!%p1626_p7), %s1581_s1, 64, %s1368_s30, [#allocation5]  }
  0x7e   : > { %s1428_s0 = scalar_lea.hbm %s1584_s4, %s1289_s29  ;;  %s276_s28 = scalar_lea.vmem [#allocation10], %s1281_s22 }
  0x7f   : > { %s285_s12 = sshll.u32 %s276_s28, 4  ;;  %s1627_s27 = sand.u32 1, %s1123_s9   ;;  %s286_s12 = int_to_ptr.vmem [resolvable:$true] %s285_s12 }
  0x80   : > { %s273_s19 = scalar_lea.sflag [#allocation11], %s1627_s27  ;;  %s1005_s23 = scalar_lea.hbm %s1428_s0, 64 }
  0x81   : > { %p1006_p12 = scmp.ne.s32.totalorder %s1428_s0, %s1005_s23  ;;  %p1628_p13 = scmp.ne.s32.totalorder %s1617_s14, 0 }
  0x82   : > { %s1010_s13 = scalar_lea.hbm %s1584_s4, 256  ;;  %p1011_p7 = scmp.lt.u32.totalorder %s1428_s0, %s1584_s4 }
  0x83   : > { %p1008_p0 = pnand %p1006_p12, %p1628_p13  ;;  %p1012_p11 = scmp.lt.u32.totalorder %s1010_s13, %s1005_s23 }
  0x84   : > { %p1014_p10 = scmp.lt.u32.totalorder %s1005_s23, %s1428_s0 }
  0x85   : > { %p1009_p9 = pneg %p1008_p0  ;;  %p1013_p1 = por %p1012_p11, %p1011_p7 }
  0x87   : > { %p1015_p4 = por %p1014_p10, %p1013_p1 }
  0x89   : > { %p1016_p6 = pnand %p1015_p4, %p1009_p9 }
  0x8b   : > { %1019 = shalt.err (!%p1016_p6)
}
  0x8c   : > { %s1020_s22 = scalar_lea.vmem %s286_s12, 64  ;;  %s1149_s16 = smov [#allocation10]  }
  0x8d   : > { %p1021_p2 = scmp.ne.s32.totalorder %s286_s12, %s1020_s22  ;;  %s1025_s24 = sshll.u32 %s1149_s16, 4  ;;  %s1026_s24 = int_to_ptr.vmem [resolvable:$false] %s1025_s24 }
  0x8e   : > { %s1027_s20 = scalar_lea.vmem %s1026_s24, 128  ;;  %p1028_p8 = scmp.lt.s32.totalorder %s286_s12, %s1026_s24 }
  0x8f   : > { %p1023_p3 = pnand %p1021_p2, %p1628_p13  ;;  %p1029_p12 = scmp.lt.s32.totalorder %s1027_s20, %s1020_s22 }
  0x91   : > { %p1024_p5 = pneg %p1023_p3  ;;  %p1030_p0 = por %p1029_p12, %p1028_p8 }
  0x93   : > { %p1031_p7 = pnand %p1030_p0, %p1024_p5 }
  0x95   : > { %1034 = shalt.err (!%p1031_p7)
}
  0x96   : > { %p1629_p11 = scmp.ne.s32.totalorder %s1616_s17, 0  ;;  %p1630_p9 = scmp.ne.s32.totalorder %s1623_s26, 0 }
  0x97   : > { %p1631_p1 = scmp.eq.s32.totalorder (!%p1630_p9), %s1338_s21, 0 }
  0x98   : > { %795 = dma.hbm_to_vmem [thread:$0]  (!%p1629_p11), %s1428_s0, 64, %s286_s12, %s273_s19  }
  0x99   : > { %305 = sbr.rel (%p1630_p9) target bundleno = 414 (0x19e), region = 40 }
  0xa0   : > { %1098 = dma.done.wait (%p1631_p1), [#allocation5], 64   ;;  %p1632_p13 = pmov %p1631_p1 }
  0xa1   : > { %s311_s14 = sand.u32 1, %s1338_s21   ;;  %s1458_s18 = sand.u32 1, %s1119_s8  }
  0xa2   : > { %1100 = vsyncadd (%p1632_p13), [#allocation5], 4294967232  ;;  %s1461_s28 = sshll.u32 %s1458_s18, 2  ;;  %s312_s17 = scalar_lea.sflag [#allocation8], %s311_s14 }
  0xa3   : > { %s315_s0 = scalar_lea.vmem [#allocation7], %s1461_s28  ;;  %p1633_p10 = scmp.ne.s32.totalorder %s1618_s25, 0 }
  0xa5   : > { %1102 = dma.done.wait (%p1633_p10), %s312_s17, 128  }
  0xa6   : > { %1104 = vsyncadd (%p1633_p10), %s312_s17, 4294967168  ;;  %s324_s26 = scalar_lea.vmem [#allocation9], %s1461_s28  ;;  %s330_s12 = scalar_lea.sflag [#allocation11], %s1458_s18 }
  0xa7   : > { %s333_s21 = scalar_lea.vmem [#allocation10], %s1461_s28 }
  0xa8   : > { %1106 = dma.done.wait (%p1633_p10), %s330_s12, 64  }
  0xa9   : > { %1108 = vsyncadd (%p1633_p10), %s330_s12, 4294967232  ;;  %v1150_v0 = vmov 4   ;;  %v1151_v1 = vmov 0   ;;  %v386_v2 = vld [vmem:[#allocation4] sm:$0xf]  ;;  %v1152_v3 = vmov 5  }
  0xaa   : > { %888 = vset.pattern.permute.xlu1 %v1150_v0  ;;  %886 = vset.pattern.permute.xlu0 %v1151_v1  ;;  %v1153_v4 = vmov 1   ;;  %v1154_v5 = vmov 8   ;;  %v1155_v6 = vmov 9   ;;  %v1156_v7 = vmov 2   ;;  %p378_p4 = scmp.lt.s32.totalorder %s1131_s11, 1  ;;  %p380_p6 = scmp.lt.s32.totalorder %s1127_s10, 1 }
  0xab   : > { %430 = vperm.xlu1 %888, %v386_v2   ;;  %397 = vperm.xlu0 %886, %v386_v2   ;;  %v1157_v8 = vmov 12   ;;  %v1158_v9 = vmov 6   ;;  %v1159_v10 = vmov 3   ;;  %v1160_v11 = vmov 13   ;;  %v1481_v25 = vld [vmem:[%s315_s0] sm:$0xf] }
  0xac   : > { %v1161_v12 = vmov 11   ;;  %v1162_v13 = vmov 10   ;;  %v1163_v14 = vmov 15   ;;  %v1164_v15 = vmov 7   ;;  %s379_s25 = scalar_select %p378_p4, %s1131_s11, 1 }
  0xad   : > { %v1165_v16 = vmov 14   ;;  %s381_s27 = scalar_select %p380_p6, %s1127_s10, 1  ;;  %v1485_v26 = vld [vmem:[%s324_s26] sm:$0xf]  ;;  %v1494_v29 = vld [vmem:[%s333_s21] sm:$0xf] }
  0xae   : > { %s759_s19 = sshll.u32 %s379_s25, 1  ;;  %vm419_vm0 = vcmask 1043456   ;;  %s761_s2 = sld [smem:[#allocation3 + $0x1]]  ;;  %vm525_vm1 = vcmask 1040384   ;;  %vm527_vm2 = vcmask 1041408   ;;  %vm529_vm3 = vcmask 1042432  }
  0xaf   : > { %889 = vset.pattern.permute.xlu1 %v1152_v3  ;;  %887 = vset.pattern.permute.xlu0 %v1153_v4  ;;  %s383_s23 = sadd.s32 %s759_s19, %s381_s27  ;;  %s387_s22 = sld [smem:[#allocation3]] }
  0xb0   : > { %435 = vperm.xlu1 %889, %v386_v2   ;;  %402 = vperm.xlu0 %887, %v386_v2   ;;  %s760_s30 = sshll.u32 %s383_s23, 2  ;;  %s762_s16 = sld [smem:[#allocation3 + $0x2]] }
  0xb1   : > { %s385_s29 = scalar_lea.vmem %s1585_s5, %s760_s30  ;;  %s763_s24 = sld [smem:[#allocation3 + $0x3]] }
  0xb2   : > { %v1496_v31 = vld [vmem:[%s385_s29] sm:$0xf]  ;;  %s766_s20 = sshll.u32 %s1131_s11, 1  ;;  %s377_s0 = scalar_lea.vmem [#allocation12], %s1461_s28 }
  0xb3   : > { %s573_s14 = sadd.s32 %s1127_s10, %s766_s20  ;;  %s577_s26 = sshll.u32 %s377_s0, 4  ;;  %s1528_s26 = int_to_ptr.vmem [resolvable:$true] %s577_s26 }
  0xb4   : > { %890 = vset.pattern.permute.xlu1 %v1154_v5  ;;  %891 = vset.pattern.permute.xlu0 %v1155_v6  ;;  %s767_s17 = sshll.u32 %s573_s14, 6  ;;  %s562_s10 = scalar_lea.sflag [#allocation6], %s1458_s18 }
  0xb5   : > { %462 = vperm.xlu1 %890, %v386_v2   ;;  %467 = vperm.xlu0 %891, %v386_v2   ;;  %s1526_s21 = scalar_lea.hbm %s1586_s6, %s767_s17  ;;  %s1035_s25 = scalar_lea.vmem %s1528_s26, 64 }
  0xb6   : > { %p1036_p2 = scmp.ne.s32.totalorder %s1528_s26, %s1035_s25  ;;  %p1634_p3 = scmp.ne.s32.totalorder %s1620_s15, 0 }
  0xb7   : > { %s1166_s28 = smov [#allocation12]  }
  0xb8   : > { %p1037_p5 = pnand %p1036_p2, %p1634_p3  ;;  %s1039_s27 = sshll.u32 %s1166_s28, 4  ;;  %s1040_s27 = int_to_ptr.vmem [resolvable:$false] %s1039_s27 }
  0xb9   : > { %892 = vset.pattern.permute.xlu1 %v1156_v7  ;;  %894 = vset.pattern.permute.xlu0 %v1157_v8  ;;  %s1041_s19 = scalar_lea.vmem %s1040_s27, 128  ;;  %p1042_p12 = scmp.lt.s32.totalorder %s1528_s26, %s1040_s27 }
  0xba   : > { %408 = vperm.xlu1 %892, %v386_v2   ;;  %494 = vperm.xlu0 %894, %v386_v2   ;;  %p1038_p8 = pneg %p1037_p5  ;;  %p1043_p0 = scmp.lt.s32.totalorder %s1041_s19, %s1035_s25 }
  0xbc   : > { %p1044_p7 = por %p1043_p0, %p1042_p12 }
  0xbe   : > { %893 = vset.pattern.permute.xlu1 %v1158_v9  ;;  %897 = vset.pattern.permute.xlu0 %v1159_v10  ;;  %p1045_p11 = pnand %p1044_p7, %p1038_p8 }
  0xbf   : > { %441 = vperm.xlu1 %893, %v386_v2   ;;  %414 = vperm.xlu0 %897, %v386_v2  }
  0xc3   : > { %895 = vset.pattern.permute.xlu1 %v1160_v11  ;;  %900 = vset.pattern.permute.xlu0 %v1161_v12 }
  0xc4   : > { %499 = vperm.xlu1 %895, %v386_v2   ;;  %479 = vperm.xlu0 %900, %v386_v2  }
  0xc8   : > { %896 = vset.pattern.permute.xlu1 %v1162_v13  ;;  %902 = vset.pattern.permute.xlu0 %v1163_v14 }
  0xc9   : > { %473 = vperm.xlu1 %896, %v386_v2  }
  0xcd   : > { %898 = vset.pattern.permute.xlu1 %v1164_v15 }
  0xce   : > { %447 = vperm.xlu1 %898, %v386_v2  }
  0xd2   : > { %899 = vset.pattern.permute.xlu1 %v1165_v16 }
  0xd3   : > { %505 = vperm.xlu1 %899, %v386_v2  }
  0xd7   : > { %901 = vset.pattern.permute.xlu1 %v1163_v14 }
  0xd8   : > { %511 = vperm.xlu1 %901, %v386_v2  }
 0x12a   : > { %v431_v17 = vpop.permute.xlu1 %430  ;;  %v398_v18 = vpop.permute.xlu0 %397 }
 0x12b   : > { %v400_v27 = vmul.f32 %v398_v18, %v1481_v25  ;;  %v433_v47 = vmul.f32 %v431_v17, %v1481_v25 }
 0x12f   : > { %v436_v19 = vpop.permute.xlu1 %435  ;;  %v403_v20 = vpop.permute.xlu0 %402 }
 0x130   : > { %v405_v28 = vmul.f32 %v403_v20, %v1485_v26  ;;  %v438_v42 = vmul.f32 %v436_v19, %v1485_v26 }
 0x132   : > { %v406_v33 = vadd.f32 %v405_v28, %v400_v27  ;;  %v439_v51 = vadd.f32 %v438_v42, %v433_v47  ;;  %v427_v28 = vstv %s387_s22  ;;  %v537_v47 = vlaneseq }
 0x134   : > { %v463_v21 = vpop.permute.xlu1 %462  ;;  %v468_v22 = vpop.permute.xlu0 %467 }
 0x135   : > { %v465_v38 = vmul.f32 %v463_v21, %v1481_v25  ;;  %v470_v39 = vmul.f32 %v468_v22, %v1485_v26 }
 0x137   : > { %v471_v44 = vadd.f32 %v470_v39, %v465_v38 }
 0x139   : > { %v409_v23 = vpop.permute.xlu1 %408  ;;  %v495_v24 = vpop.permute.xlu0 %494 }
 0x13a   : > { %v411_v34 = vmul.f32 %v409_v23, %v1494_v29  ;;  %v497_v61 = vmul.f32 %v495_v24, %v1481_v25  ;;  %v459_v23 = vstv %s761_s2 }
 0x13c   : > { %v412_v37 = vadd.f32 %v411_v34, %v406_v33 }
 0x13e   : > { %v442_v30 = vpop.permute.xlu1 %441  ;;  %v415_v32 = vpop.permute.xlu0 %414 }
 0x13f   : > { %v417_v35 = vmul.f32 %v415_v32, %v1496_v31  ;;  %v444_v48 = vmul.f32 %v442_v30, %v1494_v29 }
 0x141   : > { %v418_v40 = vadd.f32 %v417_v35, %v412_v37  ;;  %v445_v55 = vadd.f32 %v444_v48, %v439_v51  ;;  %v491_v35 = vstv %s762_s16  ;;  %v523_v37 = vstv %s763_s24 }
 0x142   : > { %v538_v48 = vshrl.u32 %v537_v47, 7 }
 0x143   : > { %v500_v36 = vpop.permute.xlu1 %499  ;;  %v480_v41 = vpop.permute.xlu0 %479  ;;  %v420_v49 = vsel %vm419_vm0, %v418_v40, 0.0 }
 0x144   : > { %v482_v46 = vmul.f32 %v480_v41, %v1496_v31  ;;  %v421_v52 = vrot.slane %v420_v49, 4  ;;  %v502_v62 = vmul.f32 %v500_v36, %v1485_v26  ;;  %v550_v51 = vsub.s32 2, %v538_v48 }
 0x146   : > { %v422_v60 = vadd.f32 %v421_v52, %v420_v49  ;;  %v503_v6 = vadd.f32 %v502_v62, %v497_v61  ;;  %v539_v49 = vsub.s32 0, %v538_v48  ;;  %v556_v52 = vsub.s32 3, %v538_v48 }
 0x148   : > { %v474_v43 = vpop.permute.xlu1 %473  ;;  %v423_v4 = vrot.slane %v422_v60, 2 }
 0x149   : > { %v476_v45 = vmul.f32 %v474_v43, %v1494_v29 }
 0x14a   : > { %v424_v12 = vadd.f32 %v423_v4, %v422_v60 }
 0x14b   : > { %v477_v50 = vadd.f32 %v476_v45, %v471_v44 }
 0x14c   : > { %v425_v18 = vrot.slane %v424_v12, 1 }
 0x14d   : > { %v483_v53 = vadd.f32 %v482_v46, %v477_v50  ;;  %v448_v54 = vpop.permute.xlu1 %447  ;;  %v544_v50 = vsub.s32 1, %v538_v48 }
 0x14e   : > { %v450_v56 = vmul.f32 %v448_v54, %v1496_v31  ;;  %v426_v24 = vadd.f32 %v425_v18, %v424_v12 }
 0x14f   : > { %v484_v57 = vsel %vm419_vm0, %v483_v53, 0.0 }
 0x150   : > { %v485_v58 = vrot.slane %v484_v57, 4  ;;  %v451_v59 = vadd.f32 %v450_v56, %v445_v55  ;;  %v428_v34 = vadd.f32 %v427_v28, %v426_v24 }
 0x152   : > { %v452_v63 = vsel %vm419_vm0, %v451_v59, 0.0  ;;  %v506_v0 = vpop.permute.xlu1 %505  ;;  %v486_v2 = vadd.f32 %v485_v58, %v484_v57 }
 0x153   : > { %v453_v1 = vrot.slane %v452_v63, 4  ;;  %v508_v3 = vmul.f32 %v506_v0, %v1494_v29 }
 0x154   : > { %v487_v9 = vrot.slane %v486_v2, 2 }
 0x155   : > { %v454_v5 = vadd.f32 %v453_v1, %v452_v63  ;;  %v509_v10 = vadd.f32 %v508_v3, %v503_v6 }
 0x156   : > { %v488_v16 = vadd.f32 %v487_v9, %v486_v2 }
 0x157   : > { %v455_v7 = vrot.slane %v454_v5, 2  ;;  %v512_v8 = vpop.permute.xlu1 %511 }
 0x158   : > { %v514_v11 = vmul.f32 %v512_v8, %v1496_v31  ;;  %v489_v22 = vrot.slane %v488_v16, 1 }
 0x159   : > { %v456_v13 = vadd.f32 %v455_v7, %v454_v5 }
 0x15a   : > { %v515_v14 = vadd.f32 %v514_v11, %v509_v10  ;;  %v490_v33 = vadd.f32 %v489_v22, %v488_v16 }
 0x15b   : > { %v457_v15 = vrot.slane %v456_v13, 1 }
 0x15c   : > { %v516_v17 = vsel %vm419_vm0, %v515_v14, 0.0  ;;  %v492_v40 = vadd.f32 %v491_v35, %v490_v33 }
 0x15d   : > { %v517_v19 = vrot.slane %v516_v17, 4  ;;  %v458_v20 = vadd.f32 %v457_v15, %v456_v13 }
 0x15f   : > { %v518_v21 = vadd.f32 %v517_v19, %v516_v17  ;;  %v460_v30 = vadd.f32 %v459_v23, %v458_v20 }
 0x161   : > { %v519_v27 = vrot.slane %v518_v21, 2  ;;  %v526_v38 = vsel %vm525_vm1, %v428_v34, %v460_v30 }
 0x162   : > { %v528_v42 = vsel %vm527_vm2, %v526_v38, %v492_v40 }
 0x163   : > { %v520_v32 = vadd.f32 %v519_v27, %v518_v21 }
 0x165   : > { %v521_v36 = vrot.slane %v520_v32, 1 }
 0x167   : > { %v522_v39 = vadd.f32 %v521_v36, %v520_v32 }
 0x169   : > { %v524_v41 = vadd.f32 %v523_v37, %v522_v39 }
 0x16b   : > { %v530_v43 = vsel %vm529_vm3, %v528_v42, %v524_v41 }
 0x16c   : > { %v764_v44 = vmul.f32 -1.442695, %v530_v43 }
 0x16e   : > { %903 = vpow2.f32 %v764_v44 }
 0x178   : > { %v904_v45 = vpop.eup %903 }
 0x179   : > { %v534_v46 = vadd.f32 1.0, %v904_v45 }
 0x17b   : > { %905 = vrcp.f32 %v534_v46 }
 0x185   : > { %v906_v53 = vpop.eup %905 }
 0x186   : > { %v540_v54 = vrot.slane %v906_v53, %v539_v49  ;;  %v545_v55 = vrot.slane %v906_v53, %v544_v50  ;;  %v551_v56 = vrot.slane %v906_v53, %v550_v51  ;;  %v557_v59 = vrot.slane %v906_v53, %v556_v52 }
 0x188   : > { %v541_v57 = vmul.f32 %v540_v54, %v1481_v25  ;;  %v546_v58 = vmul.f32 %v545_v55, %v1485_v26  ;;  %v552_v61 = vmul.f32 %v551_v56, %v1494_v29  ;;  %v558_v63 = vmul.f32 %v557_v59, %v1496_v31 }
 0x18a   : > { %v547_v60 = vadd.f32 %v546_v58, %v541_v57 }
 0x18c   : > { %v553_v62 = vadd.f32 %v552_v61, %v547_v60 }
 0x18e   : > { %v559_v0 = vadd.f32 %v558_v63, %v553_v62 }
 0x190   : > { %560 = vst [vmem:[%s377_s0] sm:$0xf] %v559_v0 }
 0x191   : > { %1048 = shalt.err (!%p1045_p11)
}
 0x192   : > { %s1049_s18 = scalar_lea.hbm %s1526_s21, 64  ;;  %s1053_s7 = scalar_lea.hbm %s1586_s6, 256 }
 0x193   : > { %p1050_p9 = scmp.ne.s32.totalorder %s1526_s21, %s1049_s18  ;;  %p1054_p10 = scmp.lt.u32.totalorder %s1526_s21, %s1586_s6 }
 0x194   : > { %p1055_p4 = scmp.lt.u32.totalorder %s1053_s7, %s1049_s18  ;;  %p1057_p2 = scmp.lt.u32.totalorder %s1049_s18, %s1526_s21 }
 0x195   : > { %p1051_p1 = pnand %p1050_p9, %p1634_p3 }
 0x196   : > { %p1056_p6 = por %p1055_p4, %p1054_p10 }
 0x197   : > { %p1052_p13 = pneg %p1051_p1 }
 0x198   : > { %p1058_p5 = por %p1057_p2, %p1056_p6 }
 0x19a   : > { %p1059_p8 = pnand %p1058_p5, %p1052_p13 }
 0x19c   : > { %1062 = shalt.err (!%p1059_p8)
}
 0x19d   : > { %780 = dma.vmem_to_hbm [thread:$0]  (%p1634_p3), %s1528_s26, 64, %s1526_s21, %s562_s10  }
 0x19e PF: > { %s1635_s2 = sld [smem:[#allocation21_spill]]  ;;  %s1636_s22 = sld [smem:[#allocation18_spill]] }
 0x19f   : > { %s1637_s16 = sld [smem:[#allocation25_spill]] }
 0x1a4   : > { %p803_p12 = scmp.ge.s32.totalorder %s1635_s2, 2  ;;  %s589_s24 = sand.u32 1, %s1636_s22  }
 0x1a5   : > { %p1638_p0 = scmp.ne.s32.totalorder %s1637_s16, 0  ;;  %s590_s20 = scalar_lea.sflag [#allocation6], %s589_s24 }
 0x1a7   : > { %p797_p7 = pnand %p803_p12, %p1638_p0 }
 0x1a9   : > { %1110 = dma.done.wait (!%p797_p7), %s590_s20, 64  }
 0x1aa   : > { %1112 = vsyncadd (!%p797_p7), %s590_s20, 4294967232  ;;  %s30_s13 = sadd.s32 1, %s1635_s2   ;;  %s1639_s15 = sld [smem:[#allocation24_spill]] }
 0x1ab   : > { %p27_p11 = scmp.ge.s32.totalorder %s30_s13, 6   ;;  %s1640_s10 = sld [smem:[#allocation19_spill]] }
 0x1ac   : > { %s1641_s11 = sld [smem:[#allocation20_spill]]  ;;  %s1642_s0 = sld [smem:[#allocation22_spill]] }
 0x1ad   : > { %s1643_s12 = sld [smem:[#allocation23_spill]]  ;;  %s1644_s7 = smov %s1119_s8 }
 0x1ae   : > { %s1645_s8 = smov %s1123_s9  ;;  %29 = sbr.rel (!%p27_p11) target bundleno = 22 (0x16), region = 117 }
 0x1b0   : > { %s1646_s9 = smov %s1639_s15 }
 0x1b5   :  { %595 = vsyncpa [#allocation5], 1 }
 0x1b6   :  { %597 = vsyncpa [#allocation5 + $0x1], 1 }
 0x1b7   :  { %598 = vsyncpa [#allocation8], 1 }
 0x1b8   :  { %600 = vsyncpa [#allocation8 + $0x1], 1 }
 0x1b9   :  { %601 = vsyncpa [#allocation11], 1 }
 0x1ba   :  { %603 = vsyncpa [#allocation11 + $0x1], 1 }
 0x1bb   :  { %604 = vsyncpa [#allocation6], 1 }
 0x1bc   :  { %606 = vsyncpa [#allocation6 + $0x1], 1 }

</bundles_post_ra>
